<compile_context>
chip_gen: v5e
topology: v5e:2x2
jax: 0.10.0
libtpu: 0.0.40
codegen_flags: <defaults>
</compile_context>

<pallas_src>
import jax
import jax.numpy as jnp
from jax.experimental import pallas as pl
from jax.experimental.pallas import tpu as pltpu

LANE = 128


def _round_up(x, m):
    return ((x + m - 1) // m) * m


def _choose_tile_b(batch, max_tile=512):
    """Batch tile: sublane-aligned, <= max_tile, minimizing last-tile padding."""
    b8 = _round_up(batch, 8)
    if b8 <= max_tile:
        return b8
    n_tiles = -(-b8 // max_tile)
    return _round_up(-(-b8 // n_tiles), 8)


def _make_dqn_kernel(n_layers):
    """Fused MLP kernel: x @ W0 + b0 -> ReLU -> ... -> x @ W_last + b_last."""

    def kernel(*refs):
        x_ref = refs[0]
        w_refs = refs[1:1 + n_layers]
        b_refs = refs[1 + n_layers:1 + 2 * n_layers]
        o_ref = refs[1 + 2 * n_layers]

        # bf16 activations into the MXU (native path), f32 accumulation,
        # bias add + ReLU in f32 on the VPU.
        h = x_ref[...].astype(jnp.bfloat16)
        for i in range(n_layers):
            acc = jnp.dot(h, w_refs[i][...],
                          preferred_element_type=jnp.float32)
            acc = acc + b_refs[i][...]
            if i < n_layers - 1:
                # Dropout (eval) == identity, then ReLU; carry bf16 forward.
                h = jnp.maximum(acc, 0.0).astype(jnp.bfloat16)
            else:
                o_ref[...] = acc.astype(o_ref.dtype)

    return kernel


def pack_dqn_params(params):
    """Pad each layer's (W, b) to lane multiples, exactly per layer.

    W is stored (in, out) so the kernel computes x @ W + b directly
    (transposed vs. torch's (out, in)).  Weights -> bf16, biases -> f32.
    """
    dims = [(int(w.shape[0]), int(w.shape[1])) for (w, _) in params]
    padded = tuple((_round_up(k, LANE), _round_up(n, LANE)) for (k, n) in dims)
    for i in range(len(params) - 1):
        assert padded[i][1] == padded[i + 1][0], "layer widths must chain"

    w_list, b_list = [], []
    for (w, b), (k, n), (kp, np_) in zip(params, dims, padded):
        w_p = jnp.zeros((kp, np_), jnp.bfloat16).at[:k, :n].set(
            w.astype(jnp.bfloat16))
        b_p = jnp.zeros((1, np_), jnp.float32).at[0, :n].set(
            b.astype(jnp.float32))
        w_list.append(w_p)
        b_list.append(b_p)

    return {
        "w": w_list,
        "b": b_list,
        "padded_dims": padded,
        "in_dim": dims[0][0],
        "out_dim": dims[-1][1],
    }


def dqn_forward(x, packed, *, max_tile_b=512):
    """x: (B, input_dim) float32.  packed: output of pack_dqn_params."""
    B, in_dim = x.shape
    assert in_dim == packed["in_dim"], (in_dim, packed["in_dim"])

    padded = packed["padded_dims"]
    n_layers = len(padded)
    k0 = padded[0][0]                 # padded input width (lane multiple)
    n_last = padded[-1][1]            # padded output width (lane multiple)

    tile_b = _choose_tile_b(B, max_tile_b)
    grid_b = -(-B // tile_b)
    b_pad = grid_b * tile_b

    # Pad activations only when actually needed (skip the extra HBM copy
    # in the already-aligned case).
    if b_pad != B or k0 != in_dim:
        x_p = jnp.zeros((b_pad, k0), jnp.float32).at[:B, :in_dim].set(
            x.astype(jnp.float32))
    else:
        x_p = x.astype(jnp.float32)

    # --- explicit VMEM budget (bytes) ---------------------------------------
    w_bytes = sum(kp * np_ * 2 for (kp, np_) in padded)        # bf16, 1 buffer
    b_bytes = sum(np_ * 4 for (_, np_) in padded)              # f32,  1 buffer
    act_in = 2 * tile_b * k0 * 4                                # x, dbl-buffer
    act_out = 2 * tile_b * n_last * 4                           # out, dbl-buf
    max_w = max(np_ for (_, np_) in padded)
    interm = 2 * tile_b * max_w * 4                             # hidden h slack
    vmem_limit = int(1.5 * (w_bytes + b_bytes + act_in + act_out + interm))
    vmem_limit += 4 << 20
    vmem_limit = min(max(vmem_limit, 16 << 20), 64 << 20)

    # --- specs ---------------------------------------------------------------
    x_spec = pl.BlockSpec((tile_b, k0), lambda i: (i, 0))
    w_specs = [
        pl.BlockSpec((kp, np_), lambda i: (0, 0), pipeline_mode=pl.Buffered(1))
        for (kp, np_) in padded
    ]
    b_specs = [
        pl.BlockSpec((1, np_), lambda i: (0, 0), pipeline_mode=pl.Buffered(1))
        for (_, np_) in padded
    ]
    out_spec = pl.BlockSpec((tile_b, n_last), lambda i: (i, 0))

    kernel = _make_dqn_kernel(n_layers)

    out_p = pl.pallas_call(
        kernel,
        out_shape=jax.ShapeDtypeStruct((b_pad, n_last), jnp.float32),
        grid=(grid_b,),
        in_specs=[x_spec] + w_specs + b_specs,
        out_specs=out_spec,
        compiler_params=pltpu.CompilerParams(
            dimension_semantics=("parallel",),
            vmem_limit_bytes=vmem_limit,
        ),
    )(x_p, *packed["w"], *packed["b"])

    if b_pad == B and n_last == packed["out_dim"]:
        return out_p
    return out_p[:B, :packed["out_dim"]]


def init_dqn_params(key, input_dim, output_dim):
    """Deterministic init mimicking torch.nn.Linear default U(-1/sqrt(fan_in), +)."""
    dims = [
        (input_dim, input_dim * 2),
        (input_dim * 2, input_dim),
        (input_dim, input_dim),
        (input_dim, input_dim // 2),
        (input_dim // 2, output_dim),
    ]
    params = []
    for (fan_in, fan_out) in dims:
        key, kw, kb = jax.random.split(key, 3)
        bound = 1.0 / jnp.sqrt(jnp.float32(fan_in))
        w = jax.random.uniform(kw, (fan_in, fan_out), jnp.float32, -bound, bound)
        b = jax.random.uniform(kb, (fan_out,), jnp.float32, -bound, bound)
        params.append((w, b))
    return params


def dqn_reference(x, params):
    """Plain-JAX reference mirroring the kernel numerics (bf16 matmul inputs,
    f32 accumulation, f32 bias/ReLU; eval-mode dropout = identity)."""
    h = x.astype(jnp.float32)
    n = len(params)
    for i, (w, b) in enumerate(params):
        h = jnp.dot(h.astype(jnp.bfloat16), w.astype(jnp.bfloat16),
                    preferred_element_type=jnp.float32) + b.astype(jnp.float32)
        if i < n - 1:
            h = jnp.maximum(h, 0.0)
    return h


if __name__ == "__main__":
    INPUT_DIM = 32     # must be even (input_dim // 2 layer)
    OUTPUT_DIM = 8
    BATCH = 64

    key = jax.random.PRNGKey(0)
    key, kx = jax.random.split(key)
    x = jax.random.normal(kx, (BATCH, INPUT_DIM), jnp.float32)

    params = init_dqn_params(key, INPUT_DIM, OUTPUT_DIM)
    packed = pack_dqn_params(params)

    out = dqn_forward(x, packed)
    out = jax.block_until_ready(out)

    ref = dqn_reference(x, params)
    assert out.shape == (BATCH, OUTPUT_DIM), out.shape
    max_err = jnp.max(jnp.abs(out - ref))
    assert jnp.allclose(out, ref, atol=1e-3, rtol=1e-3), (
        f"max abs err = {max_err}")

    print("KERNEL_OK")
</pallas_src>

<mosaic_0001>
module attributes {stable_mosaic.version = 11 : i64} {
  func.func @kernel(%arg0: i32, %arg1: memref<64x128xf32, #tpu.memory_space<vmem>>, %arg2: memref<128x128xbf16, #tpu.memory_space<vmem>>, %arg3: memref<128x128xbf16, #tpu.memory_space<vmem>>, %arg4: memref<128x128xbf16, #tpu.memory_space<vmem>>, %arg5: memref<128x128xbf16, #tpu.memory_space<vmem>>, %arg6: memref<128x128xbf16, #tpu.memory_space<vmem>>, %arg7: memref<1x128xf32, #tpu.memory_space<vmem>>, %arg8: memref<1x128xf32, #tpu.memory_space<vmem>>, %arg9: memref<1x128xf32, #tpu.memory_space<vmem>>, %arg10: memref<1x128xf32, #tpu.memory_space<vmem>>, %arg11: memref<1x128xf32, #tpu.memory_space<vmem>>, %arg12: memref<64x128xf32, #tpu.memory_space<vmem>>) attributes {dimension_semantics = [#tpu.dimension_semantics<parallel>], iteration_bounds = array<i64: 1>, scalar_prefetch = 0 : i64, scratch_operands = 0 : i64, tpu.core_type = #tpu.core_type<tc>, window_params = [{transform_indices = @transform_0, window_bounds = array<i64: 64, 128>}, {pipeline_mode = #tpu.pipeline_mode<synchronous>, transform_indices = @transform_1, window_bounds = array<i64: 128, 128>}, {pipeline_mode = #tpu.pipeline_mode<synchronous>, transform_indices = @transform_2, window_bounds = array<i64: 128, 128>}, {pipeline_mode = #tpu.pipeline_mode<synchronous>, transform_indices = @transform_3, window_bounds = array<i64: 128, 128>}, {pipeline_mode = #tpu.pipeline_mode<synchronous>, transform_indices = @transform_4, window_bounds = array<i64: 128, 128>}, {pipeline_mode = #tpu.pipeline_mode<synchronous>, transform_indices = @transform_5, window_bounds = array<i64: 128, 128>}, {pipeline_mode = #tpu.pipeline_mode<synchronous>, transform_indices = @transform_6, window_bounds = array<i64: 1, 128>}, {pipeline_mode = #tpu.pipeline_mode<synchronous>, transform_indices = @transform_7, window_bounds = array<i64: 1, 128>}, {pipeline_mode = #tpu.pipeline_mode<synchronous>, transform_indices = @transform_8, window_bounds = array<i64: 1, 128>}, {pipeline_mode = #tpu.pipeline_mode<synchronous>, transform_indices = @transform_9, window_bounds = array<i64: 1, 128>}, {pipeline_mode = #tpu.pipeline_mode<synchronous>, transform_indices = @transform_10, window_bounds = array<i64: 1, 128>}, {transform_indices = @transform_11, window_bounds = array<i64: 64, 128>}]} {
    %c0 = arith.constant 0 : index
    %c0_0 = arith.constant 0 : index
    %0 = vector.load %arg1[%c0, %c0_0] : memref<64x128xf32, #tpu.memory_space<vmem>>, vector<64x128xf32>
    %1 = arith.truncf %0 : vector<64x128xf32> to vector<64x128xbf16>
    %c0_1 = arith.constant 0 : index
    %c0_2 = arith.constant 0 : index
    %2 = vector.load %arg2[%c0_1, %c0_2] : memref<128x128xbf16, #tpu.memory_space<vmem>>, vector<128x128xbf16>
    %cst = arith.constant dense<0.000000e+00> : vector<64x128xf32>
    %3 = tpu.matmul %1, %2, %cst {dimension_numbers = #tpu.dot_dimension_numbers<[1], [0], [0], [1], [0, 0, 1, 1], [], []>} : vector<64x128xbf16>, vector<128x128xbf16>, vector<64x128xf32> -> vector<64x128xf32>
    %c0_3 = arith.constant 0 : index
    %c0_4 = arith.constant 0 : index
    %4 = vector.load %arg7[%c0_3, %c0_4] : memref<1x128xf32, #tpu.memory_space<vmem>>, vector<1x128xf32>
    %5 = vector.broadcast %4 : vector<1x128xf32> to vector<64x128xf32>
    %6 = arith.addf %3, %5 : vector<64x128xf32>
    %cst_5 = arith.constant 0.000000e+00 : f32
    %7 = vector.broadcast %cst_5 : f32 to vector<64x128xf32>
    %8 = arith.maximumf %6, %7 : vector<64x128xf32>
    %9 = arith.truncf %8 : vector<64x128xf32> to vector<64x128xbf16>
    %c0_6 = arith.constant 0 : index
    %c0_7 = arith.constant 0 : index
    %10 = vector.load %arg3[%c0_6, %c0_7] : memref<128x128xbf16, #tpu.memory_space<vmem>>, vector<128x128xbf16>
    %cst_8 = arith.constant dense<0.000000e+00> : vector<64x128xf32>
    %11 = tpu.matmul %9, %10, %cst_8 {dimension_numbers = #tpu.dot_dimension_numbers<[1], [0], [0], [1], [0, 0, 1, 1], [], []>} : vector<64x128xbf16>, vector<128x128xbf16>, vector<64x128xf32> -> vector<64x128xf32>
    %c0_9 = arith.constant 0 : index
    %c0_10 = arith.constant 0 : index
    %12 = vector.load %arg8[%c0_9, %c0_10] : memref<1x128xf32, #tpu.memory_space<vmem>>, vector<1x128xf32>
    %13 = vector.broadcast %12 : vector<1x128xf32> to vector<64x128xf32>
    %14 = arith.addf %11, %13 : vector<64x128xf32>
    %cst_11 = arith.constant 0.000000e+00 : f32
    %15 = vector.broadcast %cst_11 : f32 to vector<64x128xf32>
    %16 = arith.maximumf %14, %15 : vector<64x128xf32>
    %17 = arith.truncf %16 : vector<64x128xf32> to vector<64x128xbf16>
    %c0_12 = arith.constant 0 : index
    %c0_13 = arith.constant 0 : index
    %18 = vector.load %arg4[%c0_12, %c0_13] : memref<128x128xbf16, #tpu.memory_space<vmem>>, vector<128x128xbf16>
    %cst_14 = arith.constant dense<0.000000e+00> : vector<64x128xf32>
    %19 = tpu.matmul %17, %18, %cst_14 {dimension_numbers = #tpu.dot_dimension_numbers<[1], [0], [0], [1], [0, 0, 1, 1], [], []>} : vector<64x128xbf16>, vector<128x128xbf16>, vector<64x128xf32> -> vector<64x128xf32>
    %c0_15 = arith.constant 0 : index
    %c0_16 = arith.constant 0 : index
    %20 = vector.load %arg9[%c0_15, %c0_16] : memref<1x128xf32, #tpu.memory_space<vmem>>, vector<1x128xf32>
    %21 = vector.broadcast %20 : vector<1x128xf32> to vector<64x128xf32>
    %22 = arith.addf %19, %21 : vector<64x128xf32>
    %cst_17 = arith.constant 0.000000e+00 : f32
    %23 = vector.broadcast %cst_17 : f32 to vector<64x128xf32>
    %24 = arith.maximumf %22, %23 : vector<64x128xf32>
    %25 = arith.truncf %24 : vector<64x128xf32> to vector<64x128xbf16>
    %c0_18 = arith.constant 0 : index
    %c0_19 = arith.constant 0 : index
    %26 = vector.load %arg5[%c0_18, %c0_19] : memref<128x128xbf16, #tpu.memory_space<vmem>>, vector<128x128xbf16>
    %cst_20 = arith.constant dense<0.000000e+00> : vector<64x128xf32>
    %27 = tpu.matmul %25, %26, %cst_20 {dimension_numbers = #tpu.dot_dimension_numbers<[1], [0], [0], [1], [0, 0, 1, 1], [], []>} : vector<64x128xbf16>, vector<128x128xbf16>, vector<64x128xf32> -> vector<64x128xf32>
    %c0_21 = arith.constant 0 : index
    %c0_22 = arith.constant 0 : index
    %28 = vector.load %arg10[%c0_21, %c0_22] : memref<1x128xf32, #tpu.memory_space<vmem>>, vector<1x128xf32>
    %29 = vector.broadcast %28 : vector<1x128xf32> to vector<64x128xf32>
    %30 = arith.addf %27, %29 : vector<64x128xf32>
    %cst_23 = arith.constant 0.000000e+00 : f32
    %31 = vector.broadcast %cst_23 : f32 to vector<64x128xf32>
    %32 = arith.maximumf %30, %31 : vector<64x128xf32>
    %33 = arith.truncf %32 : vector<64x128xf32> to vector<64x128xbf16>
    %c0_24 = arith.constant 0 : index
    %c0_25 = arith.constant 0 : index
    %34 = vector.load %arg6[%c0_24, %c0_25] : memref<128x128xbf16, #tpu.memory_space<vmem>>, vector<128x128xbf16>
    %cst_26 = arith.constant dense<0.000000e+00> : vector<64x128xf32>
    %35 = tpu.matmul %33, %34, %cst_26 {dimension_numbers = #tpu.dot_dimension_numbers<[1], [0], [0], [1], [0, 0, 1, 1], [], []>} : vector<64x128xbf16>, vector<128x128xbf16>, vector<64x128xf32> -> vector<64x128xf32>
    %c0_27 = arith.constant 0 : index
    %c0_28 = arith.constant 0 : index
    %36 = vector.load %arg11[%c0_27, %c0_28] : memref<1x128xf32, #tpu.memory_space<vmem>>, vector<1x128xf32>
    %37 = vector.broadcast %36 : vector<1x128xf32> to vector<64x128xf32>
    %38 = arith.addf %35, %37 : vector<64x128xf32>
    %c0_29 = arith.constant 0 : index
    %c0_30 = arith.constant 0 : index
    %39 = vector.load %arg12[%c0_29, %c0_30] : memref<64x128xf32, #tpu.memory_space<vmem>>, vector<64x128xf32>
    tpu.vector_store %arg12[%c0_29, %c0_30], %38 {strides = array<i32>} : memref<64x128xf32, #tpu.memory_space<vmem>>, vector<64x128xf32>,
    return
  }
  func.func @transform_0(%arg0: i32) -> (i32, i32) {
    %c0_i32 = arith.constant 0 : i32
    %c0_i32_0 = arith.constant 0 : i32
    return %arg0, %c0_i32 : i32, i32
  }
  func.func @transform_1(%arg0: i32) -> (i32, i32) {
    %c0_i32 = arith.constant 0 : i32
    %c0_i32_0 = arith.constant 0 : i32
    %c0_i32_1 = arith.constant 0 : i32
    return %c0_i32, %c0_i32_0 : i32, i32
  }
  func.func @transform_2(%arg0: i32) -> (i32, i32) {
    %c0_i32 = arith.constant 0 : i32
    %c0_i32_0 = arith.constant 0 : i32
    %c0_i32_1 = arith.constant 0 : i32
    return %c0_i32, %c0_i32_0 : i32, i32
  }
  func.func @transform_3(%arg0: i32) -> (i32, i32) {
    %c0_i32 = arith.constant 0 : i32
    %c0_i32_0 = arith.constant 0 : i32
    %c0_i32_1 = arith.constant 0 : i32
    return %c0_i32, %c0_i32_0 : i32, i32
  }
  func.func @transform_4(%arg0: i32) -> (i32, i32) {
    %c0_i32 = arith.constant 0 : i32
    %c0_i32_0 = arith.constant 0 : i32
    %c0_i32_1 = arith.constant 0 : i32
    return %c0_i32, %c0_i32_0 : i32, i32
  }
  func.func @transform_5(%arg0: i32) -> (i32, i32) {
    %c0_i32 = arith.constant 0 : i32
    %c0_i32_0 = arith.constant 0 : i32
    %c0_i32_1 = arith.constant 0 : i32
    return %c0_i32, %c0_i32_0 : i32, i32
  }
  func.func @transform_6(%arg0: i32) -> (i32, i32) {
    %c0_i32 = arith.constant 0 : i32
    %c0_i32_0 = arith.constant 0 : i32
    %c0_i32_1 = arith.constant 0 : i32
    return %c0_i32, %c0_i32_0 : i32, i32
  }
  func.func @transform_7(%arg0: i32) -> (i32, i32) {
    %c0_i32 = arith.constant 0 : i32
    %c0_i32_0 = arith.constant 0 : i32
    %c0_i32_1 = arith.constant 0 : i32
    return %c0_i32, %c0_i32_0 : i32, i32
  }
  func.func @transform_8(%arg0: i32) -> (i32, i32) {
    %c0_i32 = arith.constant 0 : i32
    %c0_i32_0 = arith.constant 0 : i32
    %c0_i32_1 = arith.constant 0 : i32
    return %c0_i32, %c0_i32_0 : i32, i32
  }
  func.func @transform_9(%arg0: i32) -> (i32, i32) {
    %c0_i32 = arith.constant 0 : i32
    %c0_i32_0 = arith.constant 0 : i32
    %c0_i32_1 = arith.constant 0 : i32
    return %c0_i32, %c0_i32_0 : i32, i32
  }
  func.func @transform_10(%arg0: i32) -> (i32, i32) {
    %c0_i32 = arith.constant 0 : i32
    %c0_i32_0 = arith.constant 0 : i32
    %c0_i32_1 = arith.constant 0 : i32
    return %c0_i32, %c0_i32_0 : i32, i32
  }
  func.func @transform_11(%arg0: i32) -> (i32, i32) {
    %c0_i32 = arith.constant 0 : i32
    %c0_i32_0 = arith.constant 0 : i32
    return %arg0, %c0_i32 : i32, i32
  }
}

</mosaic_0001>

<bundles_post_ra>
// kernel: tpu_custom_call.1
= control target key start
LH: loop header
LB: loop body
LE: loop exit
PB: predicated region body
PF: predicated region fallthrough
CT: control target
= control target key end

     0   :  { %16 = vsyncpa [#allocation3], 0  ;;  %s1246_s0 = inlined_call_operand.hbm [shape: f32[64,128], index: 0, kind: input, shape index: {}]   ;;  %s1247_s1 = inlined_call_operand.hbm [shape: bf16[128,128], index: 1, kind: input, shape index: {}]   ;;  %s1248_s2 = inlined_call_operand.hbm [shape: bf16[128,128], index: 2, kind: input, shape index: {}]   ;;  %s1249_s3 = inlined_call_operand.hbm [shape: bf16[128,128], index: 3, kind: input, shape index: {}]   ;;  %s1250_s4 = inlined_call_operand.hbm [shape: bf16[128,128], index: 4, kind: input, shape index: {}]   ;;  %s1251_s5 = inlined_call_operand.hbm [shape: bf16[128,128], index: 5, kind: input, shape index: {}]   ;;  %s1252_s6 = inlined_call_operand.vmem [shape: f32[1,128], index: 6, kind: input, shape index: {}]   ;;  %s1253_s7 = inlined_call_operand.vmem [shape: f32[1,128], index: 7, kind: input, shape index: {}]   ;;  %s1254_s8 = inlined_call_operand.vmem [shape: f32[1,128], index: 8, kind: input, shape index: {}]   ;;  %s1255_s9 = inlined_call_operand.vmem [shape: f32[1,128], index: 9, kind: input, shape index: {}]   ;;  %s1256_s10 = inlined_call_operand.vmem [shape: f32[1,128], index: 10, kind: input, shape index: {}]   ;;  %s1257_s11 = inlined_call_operand.hbm [shape: f32[64,128], index: 11, kind: output, shape index: {}]  }
   0x1   :  { %17 = vsyncpa [#allocation6], 0 }
   0x2   :  { %18 = vsyncpa [#allocation9], 0 }
   0x3   :  { %19 = vsyncpa [#allocation12], 0  ;;  %s38_s19 = sshll.u32 %s1247_s1, 4  ;;  %s39_s19 = int_to_ptr.hbm [resolvable:$true] %s38_s19 }
   0x4   :  { %20 = vsyncpa [#allocation4], 0  ;;  %s1118_s20 = smov [#allocation5]   ;;  %s64_s24 = sshll.u32 %s1249_s3, 4  ;;  %s65_s24 = int_to_ptr.hbm [resolvable:$true] %s64_s24 }
   0x5   :  { %s40_s21 = sshll.u32 %s1118_s20, 4  ;;  %s1119_s25 = smov 64   ;;  %s41_s21 = int_to_ptr.vmem [resolvable:$true] %s40_s21 }
   0x6   :  { %s1120_s26 = smov 4   ;;  %s1121_s27 = smov [#allocation8]  }
   0x7   :  { %46 = dma.hbm_to_vmem [thread:$0]  %s39_s19, 1024, %s41_s21, [#allocation6], %s1119_s25, %s1119_s25, %s1120_s26  }
   0x8   :  { %s66_s28 = sshll.u32 %s1121_s27, 4  ;;  %s25_s30 = sshll.u32 %s1246_s0, 4  ;;  %s67_s28 = int_to_ptr.vmem [resolvable:$true] %s66_s28  ;;  %s26_s30 = int_to_ptr.hbm [resolvable:$true] %s25_s30 }
   0x9   :  { %72 = dma.hbm_to_vmem [thread:$0]  %s65_s24, 1024, %s67_s28, [#allocation9], %s1119_s25, %s1119_s25, %s1120_s26  }
   0xa   :  { %s1122_s3 = smov [#allocation2]   ;;  %s51_s15 = sshll.u32 %s1248_s2, 4  ;;  %s52_s15 = int_to_ptr.hbm [resolvable:$true] %s51_s15 }
   0xb   :  { %s27_s12 = sshll.u32 %s1122_s3, 4  ;;  %s1123_s16 = smov 128   ;;  %s28_s12 = int_to_ptr.vmem [resolvable:$true] %s27_s12 }
   0xc   :  { %s1124_s17 = smov 8   ;;  %s1125_s0 = smov [#allocation7]  }
   0xd   :  { %33 = dma.hbm_to_vmem [thread:$0]  %s26_s30, 1024, %s28_s12, [#allocation3], %s1123_s16, %s1123_s16, %s1124_s17  }
   0xe   :  { %s53_s18 = sshll.u32 %s1125_s0, 4  ;;  %s77_s21 = sshll.u32 %s1250_s4, 4  ;;  %s54_s18 = int_to_ptr.vmem [resolvable:$true] %s53_s18  ;;  %s78_s21 = int_to_ptr.hbm [resolvable:$true] %s77_s21 }
   0xf   :  { %59 = dma.hbm_to_vmem [thread:$0]  %s52_s15, 1024, %s54_s18, [#allocation6], %s1119_s25, %s1119_s25, %s1120_s26  }
  0x10   :  { %s90_s23 = sshll.u32 %s1251_s5, 4  ;;  %s1126_s24 = smov [#allocation10]   ;;  %s91_s23 = int_to_ptr.hbm [resolvable:$true] %s90_s23 }
  0x11   :  { %s79_s27 = sshll.u32 %s1126_s24, 4  ;;  %s1127_s28 = smov [#allocation11]   ;;  %s80_s27 = int_to_ptr.vmem [resolvable:$true] %s79_s27 }
  0x12   :  { %85 = dma.hbm_to_vmem [thread:$0]  %s78_s21, 1024, %s80_s27, [#allocation9], %s1119_s25, %s1119_s25, %s1120_s26  }
  0x13   :  { %s92_s4 = sshll.u32 %s1127_s28, 4  ;;  %s93_s4 = int_to_ptr.vmem [resolvable:$true] %s92_s4 }
  0x14   :  { %98 = dma.hbm_to_vmem [thread:$0]  %s91_s23, 1024, %s93_s4, [#allocation12], %s1119_s25, %s1119_s25, %s1120_s26  }
  0x15   :  { %1108 = dma.done.wait [#allocation3], 1024  }
  0x16   :  { %1109 = vsyncadd [#allocation3], 4294966272 }
  0x17   :  { %1110 = dma.done.wait [#allocation6], 2048  }
  0x18   :  { %1111 = vsyncadd [#allocation6], 4294965248 }
  0x19   :  { %1112 = dma.done.wait [#allocation9], 2048  }
  0x1a   :  { %1113 = vsyncadd [#allocation9], 4294965248 }
  0x1b   :  { %1114 = dma.done.wait [#allocation12], 1024  }
  0x1c   :  { %1115 = vsyncadd [#allocation12], 4294966272  ;;  %v875_v0 = vld [vmem:[#allocation5 + $0x38] sm:$0xff]  ;;  %v874_v1 = vld [vmem:[#allocation5 + $0x30] sm:$0xff]  ;;  %s692_s14 = sshll.u32 %s1257_s11, 4  ;;  %s693_s14 = int_to_ptr.hbm [resolvable:$true] %s692_s14 }
  0x1d   :  { %213 = vmatpush.bf16.msra.mxu0 %v875_v0  ;;  %908 = vmatpush.bf16.msra.mxu1 %v875_v0  ;;  %v873_v2 = vld [vmem:[#allocation5 + $0x28] sm:$0xff]  ;;  %v872_v3 = vld [vmem:[#allocation5 + $0x20] sm:$0xff]  ;;  %v871_v4 = vld [vmem:[#allocation5 + $0x18] sm:$0xff] }
  0x1e   :  { %v870_v5 = vld [vmem:[#allocation5 + $0x10] sm:$0xff]  ;;  %v869_v6 = vld [vmem:[#allocation5 + $0x8] sm:$0xff]  ;;  %v868_v7 = vld [vmem:[#allocation5] sm:$0xff] }
  0x1f   :  { %v133_v8 = vld [vmem:[#allocation2] sm:$0xff]  ;;  %v134_v9 = vld [vmem:[#allocation2 + $0x8] sm:$0xff]  ;;  %v883_v12 = vld [vmem:[#allocation7 + $0x38] sm:$0xff] }
  0x20   :  { %v137_v10 = vld [vmem:[#allocation2 + $0x20] sm:$0xff]  ;;  %v138_v11 = vld [vmem:[#allocation2 + $0x28] sm:$0xff]  ;;  %v141_v13 = vpack.c.bf16 %v134_v9, %v133_v8  ;;  %v882_v15 = vld [vmem:[#allocation7 + $0x30] sm:$0xff] }
  0x21   :  { %214 = vmatpush.bf16.msra.mxu0 %v874_v1  ;;  %909 = vmatpush.bf16.msra.mxu1 %v874_v1  ;;  %v143_v14 = vpack.c.bf16 %v138_v11, %v137_v10  ;;  %v881_v16 = vld [vmem:[#allocation7 + $0x28] sm:$0xff]  ;;  %v880_v17 = vld [vmem:[#allocation7 + $0x20] sm:$0xff]  ;;  %v135_v18 = vld [vmem:[#allocation2 + $0x10] sm:$0xff] }
  0x22   :  { %v136_v19 = vld [vmem:[#allocation2 + $0x18] sm:$0xff]  ;;  %v139_v20 = vld [vmem:[#allocation2 + $0x30] sm:$0xff]  ;;  %v877_v26 = vld [vmem:[#allocation7 + $0x8] sm:$0xff] }
  0x23   :  { %v140_v21 = vld [vmem:[#allocation2 + $0x38] sm:$0xff]  ;;  %v142_v23 = vpack.c.bf16 %v136_v19, %v135_v18  ;;  %v878_v25 = vld [vmem:[#allocation7 + $0x10] sm:$0xff]  ;;  %v876_v27 = vld [vmem:[#allocation7] sm:$0xff] }
  0x24   :  { %v879_v22 = vld [vmem:[#allocation7 + $0x18] sm:$0xff]  ;;  %v144_v24 = vpack.c.bf16 %v140_v21, %v139_v20  ;;  %v935_v29 = vld [vmem:[%s1252_s6] ss:$0 sm:$0xff]  ;;  %v890_v46 = vld [vmem:[#allocation8 + $0x30] sm:$0xff] }
  0x25   :  { %215 = vmatpush.bf16.msra.mxu0 %v873_v2  ;;  %910 = vmatpush.bf16.msra.mxu1 %v873_v2  ;;  %v891_v45 = vld [vmem:[#allocation8 + $0x38] sm:$0xff]  ;;  %v889_v49 = vld [vmem:[#allocation8 + $0x28] sm:$0xff]  ;;  %v888_v53 = vld [vmem:[#allocation8 + $0x20] sm:$0xff] }
  0x26   :  { %431 = vmatpush.bf16.msra.mxu2 %v891_v45  ;;  %v887_v61 = vld [vmem:[#allocation8 + $0x18] sm:$0xff]  ;;  %v886_v62 = vld [vmem:[#allocation8 + $0x10] sm:$0xff]  ;;  %v885_v63 = vld [vmem:[#allocation8 + $0x8] sm:$0xff] }
  0x27   :  { %v884_v0 = vld [vmem:[#allocation8] sm:$0xff]  ;;  %v898_v18 = vld [vmem:[#allocation10 + $0x30] sm:$0xff]  ;;  %v897_v19 = vld [vmem:[#allocation10 + $0x28] sm:$0xff] }
  0x28   :  { %v936_v2 = vld [vmem:[%s1253_s7] ss:$0 sm:$0xff] }
  0x29   :  { %216 = vmatpush.bf16.msra.mxu0 %v872_v3  ;;  %911 = vmatpush.bf16.msra.mxu1 %v872_v3 }
  0x2a   :  { %432 = vmatpush.bf16.msra.mxu2 %v890_v46 }
  0x2d   :  { %217 = vmatpush.bf16.msra.mxu0 %v871_v4  ;;  %912 = vmatpush.bf16.msra.mxu1 %v871_v4 }
  0x2e   :  { %433 = vmatpush.bf16.msra.mxu2 %v889_v49 }
  0x31   :  { %218 = vmatpush.bf16.msra.mxu0 %v870_v5  ;;  %913 = vmatpush.bf16.msra.mxu1 %v870_v5 }
  0x32   :  { %434 = vmatpush.bf16.msra.mxu2 %v888_v53  ;;  %v907_v53 = vld [vmem:[#allocation11 + $0x38] sm:$0xff] }
  0x35   :  { %219 = vmatpush.bf16.msra.mxu0 %v869_v6  ;;  %914 = vmatpush.bf16.msra.mxu1 %v869_v6 }
  0x36   :  { %435 = vmatpush.bf16.msra.mxu2 %v887_v61 }
  0x39   :  { %220 = vmatpush.bf16.msra.mxu0 %v868_v7  ;;  %915 = vmatpush.bf16.msra.mxu1 %v868_v7 }
  0x3a   :  { %436 = vmatpush.bf16.msra.mxu2 %v886_v62 }
  0x3c   :  { %221 = vmatmul.bf16.vlgmr.msra.gmra.mxu0 %v141_v13  ;;  %231 = vmatmul.bf16.vlgmr.msra.gmra.mxu1 %v143_v14 }
  0x3d   :  { %322 = vmatpush.bf16.msrb.mxu1 %v883_v12  ;;  %649 = vmatpush.bf16.msrb.mxu0 %v907_v53 }
  0x3e   :  { %437 = vmatpush.bf16.msra.mxu2 %v885_v63 }
  0x41   :  { %323 = vmatpush.bf16.msrb.mxu1 %v882_v15 }
  0x42   :  { %438 = vmatpush.bf16.msra.mxu2 %v884_v0 }
  0x45   :  { %324 = vmatpush.bf16.msrb.mxu1 %v881_v16  ;;  %v899_v16 = vld [vmem:[#allocation10 + $0x38] sm:$0xff] }
  0x46   :  { %540 = vmatpush.bf16.msra.mxu3 %v899_v16  ;;  %916 = vmatpush.bf16.msrb.mxu2 %v907_v53 }
  0x49   :  { %325 = vmatpush.bf16.msrb.mxu1 %v880_v17 }
  0x4a   :  { %541 = vmatpush.bf16.msra.mxu3 %v898_v18 }
  0x4c   :  { %226 = vmatmul.bf16.gmra.mxu0 %v142_v23  ;;  %236 = vmatmul.bf16.gmra.mxu1 %v144_v24  ;;  %v896_v23 = vld [vmem:[#allocation10 + $0x20] sm:$0xff] }
  0x4d   :  { %326 = vmatpush.bf16.msrb.mxu1 %v879_v22 }
  0x4e   :  { %542 = vmatpush.bf16.msra.mxu3 %v897_v19 }
  0x51   :  { %327 = vmatpush.bf16.msrb.mxu1 %v878_v25 }
  0x52   :  { %543 = vmatpush.bf16.msra.mxu3 %v896_v23 }
  0x55   :  { %328 = vmatpush.bf16.msrb.mxu1 %v877_v26 }
  0x59   :  { %329 = vmatpush.bf16.msrb.mxu1 %v876_v27 }
  0xb9   :  { %v222_v28 = vpop.f32.mrf.mxu0  ;;  %v232_v37 = vpop.f32.mrf.mxu1 }
  0xba   :  { %v223_v30 = vadd.f32 %v935_v29, %v222_v28  ;;  %v233_v47 = vadd.f32 %v935_v29, %v232_v37  ;;  %v892_v37 = vld [vmem:[#allocation10] sm:$0xff] }
  0xbc   :  { %v242_v33 = vmax.f32 %v223_v30, 0.0  ;;  %v246_v51 = vmax.f32 %v233_v47, 0.0 }
  0xc1   :  { %v224_v31 = vpop.f32.mrf.mxu0  ;;  %v234_v44 = vpop.f32.mrf.mxu1 }
  0xc2   :  { %v225_v32 = vadd.f32 %v935_v29, %v224_v31  ;;  %v235_v48 = vadd.f32 %v935_v29, %v234_v44 }
  0xc4   :  { %v243_v34 = vmax.f32 %v225_v32, 0.0  ;;  %v247_v52 = vmax.f32 %v235_v48, 0.0 }
  0xc6   :  { %v250_v35 = vpack.c.bf16 %v243_v34, %v242_v33  ;;  %v252_v54 = vpack.c.bf16 %v247_v52, %v246_v51  ;;  %v895_v34 = vld [vmem:[#allocation10 + $0x18] sm:$0xff] }
  0xc7   :  { %544 = vmatpush.bf16.msra.mxu3 %v895_v34 }
  0xc8   :  { %330 = vmatmul.bf16.vlgmr.msrb.gmra.mxu1 %v250_v35  ;;  %v894_v35 = vld [vmem:[#allocation10 + $0x10] sm:$0xff] }
  0xc9   :  { %v227_v36 = vpop.f32.mrf.mxu0  ;;  %v237_v50 = vpop.f32.mrf.mxu1 }
  0xca   :  { %v228_v38 = vadd.f32 %v935_v29, %v227_v36  ;;  %v238_v56 = vadd.f32 %v935_v29, %v237_v50  ;;  %v893_v36 = vld [vmem:[#allocation10 + $0x8] sm:$0xff] }
  0xcb   :  { %545 = vmatpush.bf16.msra.mxu3 %v894_v35 }
  0xcc   :  { %v244_v41 = vmax.f32 %v228_v38, 0.0  ;;  %v248_v58 = vmax.f32 %v238_v56, 0.0  ;;  %v905_v56 = vld [vmem:[#allocation11 + $0x28] sm:$0xff] }
  0xcf   :  { %546 = vmatpush.bf16.msra.mxu3 %v893_v36 }
  0xd1   :  { %v229_v39 = vpop.f32.mrf.mxu0  ;;  %v239_v55 = vpop.f32.mrf.mxu1 }
  0xd2   :  { %v230_v40 = vadd.f32 %v935_v29, %v229_v39  ;;  %v240_v57 = vadd.f32 %v935_v29, %v239_v55  ;;  %v937_v39 = vld [vmem:[%s1254_s8] ss:$0 sm:$0xff]  ;;  %v906_v55 = vld [vmem:[#allocation11 + $0x30] sm:$0xff] }
  0xd3   :  { %547 = vmatpush.bf16.msra.mxu3 %v892_v37  ;;  %650 = vmatpush.bf16.msrb.mxu0 %v906_v55 }
  0xd4   :  { %v245_v42 = vmax.f32 %v230_v40, 0.0  ;;  %v249_v59 = vmax.f32 %v240_v57, 0.0  ;;  %917 = vmatpush.bf16.msrb.mxu2 %v906_v55 }
  0xd6   :  { %v251_v43 = vpack.c.bf16 %v245_v42, %v244_v41  ;;  %v253_v60 = vpack.c.bf16 %v249_v59, %v248_v58 }
  0xd7   :  { %651 = vmatpush.bf16.msrb.mxu0 %v905_v56 }
  0xd8   :  { %335 = vmatmul.bf16.gmra.mxu1 %v251_v43  ;;  %918 = vmatpush.bf16.msrb.mxu2 %v905_v56 }
  0xe8   :  { %340 = vmatmul.bf16.gmra.mxu1 %v252_v54 }
  0xf8   :  { %345 = vmatmul.bf16.gmra.mxu1 %v253_v60  ;;  %v904_v60 = vld [vmem:[#allocation11 + $0x20] sm:$0xff] }
  0xf9   :  { %652 = vmatpush.bf16.msrb.mxu0 %v904_v60  ;;  %919 = vmatpush.bf16.msrb.mxu2 %v904_v60 }
 0x145   :  { %v331_v1 = vpop.f32.mrf.mxu1 }
 0x146   :  { %v332_v3 = vadd.f32 %v936_v2, %v331_v1 }
 0x148   :  { %v351_v6 = vmax.f32 %v332_v3, 0.0 }
 0x14d   :  { %v333_v4 = vpop.f32.mrf.mxu1 }
 0x14e   :  { %v334_v5 = vadd.f32 %v936_v2, %v333_v4 }
 0x150   :  { %v352_v7 = vmax.f32 %v334_v5, 0.0 }
 0x152   :  { %v359_v8 = vpack.c.bf16 %v352_v7, %v351_v6  ;;  %v903_v7 = vld [vmem:[#allocation11 + $0x18] sm:$0xff] }
 0x153   :  { %653 = vmatpush.bf16.msrb.mxu0 %v903_v7  ;;  %920 = vmatpush.bf16.msrb.mxu2 %v903_v7 }
 0x154   :  { %439 = vmatmul.bf16.vlgmr.msra.gmra.mxu2 %v359_v8  ;;  %v902_v8 = vld [vmem:[#allocation11 + $0x10] sm:$0xff] }
 0x155   :  { %v336_v9 = vpop.f32.mrf.mxu1 }
 0x156   :  { %v337_v10 = vadd.f32 %v936_v2, %v336_v9  ;;  %v901_v9 = vld [vmem:[#allocation11 + $0x8] sm:$0xff] }
 0x157   :  { %654 = vmatpush.bf16.msrb.mxu0 %v902_v8  ;;  %921 = vmatpush.bf16.msrb.mxu2 %v902_v8 }
 0x158   :  { %v353_v13 = vmax.f32 %v337_v10, 0.0  ;;  %v900_v10 = vld [vmem:[#allocation11] sm:$0xff] }
 0x15b   :  { %655 = vmatpush.bf16.msrb.mxu0 %v901_v9  ;;  %922 = vmatpush.bf16.msrb.mxu2 %v901_v9 }
 0x15d   :  { %v338_v11 = vpop.f32.mrf.mxu1 }
 0x15e   :  { %v339_v12 = vadd.f32 %v936_v2, %v338_v11 }
 0x15f   :  { %656 = vmatpush.bf16.msrb.mxu0 %v900_v10  ;;  %923 = vmatpush.bf16.msrb.mxu2 %v900_v10 }
 0x160   :  { %v354_v14 = vmax.f32 %v339_v12, 0.0  ;;  %v938_v12 = vld [vmem:[%s1255_s9] ss:$0 sm:$0xff] }
 0x162   :  { %v360_v15 = vpack.c.bf16 %v354_v14, %v353_v13 }
 0x164   :  { %444 = vmatmul.bf16.gmra.mxu2 %v360_v15 }
 0x165   :  { %v341_v17 = vpop.f32.mrf.mxu1 }
 0x166   :  { %v342_v20 = vadd.f32 %v936_v2, %v341_v17 }
 0x168   :  { %v355_v24 = vmax.f32 %v342_v20, 0.0 }
 0x16d   :  { %v343_v21 = vpop.f32.mrf.mxu1 }
 0x16e   :  { %v344_v22 = vadd.f32 %v936_v2, %v343_v21 }
 0x170   :  { %v356_v25 = vmax.f32 %v344_v22, 0.0 }
 0x172   :  { %v361_v26 = vpack.c.bf16 %v356_v25, %v355_v24 }
 0x174   :  { %449 = vmatmul.bf16.gmra.mxu2 %v361_v26 }
 0x175   :  { %v346_v27 = vpop.f32.mrf.mxu1 }
 0x176   :  { %v347_v28 = vadd.f32 %v936_v2, %v346_v27 }
 0x178   :  { %v357_v31 = vmax.f32 %v347_v28, 0.0 }
 0x17d   :  { %v348_v29 = vpop.f32.mrf.mxu1 }
 0x17e   :  { %v349_v30 = vadd.f32 %v936_v2, %v348_v29 }
 0x180   :  { %v358_v32 = vmax.f32 %v349_v30, 0.0 }
 0x182   :  { %v362_v33 = vpack.c.bf16 %v358_v32, %v357_v31 }
 0x184   :  { %454 = vmatmul.bf16.gmra.mxu2 %v362_v33 }
 0x1d7   :  { %v440_v38 = vpop.f32.mrf.mxu2 }
 0x1d8   :  { %v441_v40 = vadd.f32 %v937_v39, %v440_v38 }
 0x1da   :  { %v460_v43 = vmax.f32 %v441_v40, 0.0  ;;  %v939_v40 = vld [vmem:[%s1256_s10] ss:$0 sm:$0xff]  ;;  %s1128_s10 = smov [#allocation13]  }
 0x1db   :  { %s690_s3 = sshll.u32 %s1128_s10, 4  ;;  %s691_s3 = int_to_ptr.vmem [resolvable:$true] %s690_s3 }
 0x1df   :  { %v442_v41 = vpop.f32.mrf.mxu2 }
 0x1e0   :  { %v443_v42 = vadd.f32 %v937_v39, %v442_v41 }
 0x1e2   :  { %v461_v44 = vmax.f32 %v443_v42, 0.0 }
 0x1e4   :  { %v468_v45 = vpack.c.bf16 %v461_v44, %v460_v43 }
 0x1e6   :  { %548 = vmatmul.bf16.vlgmr.msra.gmra.mxu3 %v468_v45 }
 0x1e7   :  { %v445_v46 = vpop.f32.mrf.mxu2 }
 0x1e8   :  { %v446_v47 = vadd.f32 %v937_v39, %v445_v46 }
 0x1ea   :  { %v462_v50 = vmax.f32 %v446_v47, 0.0 }
 0x1ef   :  { %v447_v48 = vpop.f32.mrf.mxu2 }
 0x1f0   :  { %v448_v49 = vadd.f32 %v937_v39, %v447_v48 }
 0x1f2   :  { %v463_v51 = vmax.f32 %v448_v49, 0.0 }
 0x1f4   :  { %v469_v52 = vpack.c.bf16 %v463_v51, %v462_v50 }
 0x1f6   :  { %553 = vmatmul.bf16.gmra.mxu3 %v469_v52 }
 0x1f7   :  { %v450_v54 = vpop.f32.mrf.mxu2 }
 0x1f8   :  { %v451_v57 = vadd.f32 %v937_v39, %v450_v54 }
 0x1fa   :  { %v464_v61 = vmax.f32 %v451_v57, 0.0 }
 0x1ff   :  { %v452_v58 = vpop.f32.mrf.mxu2 }
 0x200   :  { %v453_v59 = vadd.f32 %v937_v39, %v452_v58 }
 0x202   :  { %v465_v62 = vmax.f32 %v453_v59, 0.0 }
 0x204   :  { %v470_v63 = vpack.c.bf16 %v465_v62, %v464_v61 }
 0x206   :  { %558 = vmatmul.bf16.gmra.mxu3 %v470_v63 }
 0x207   :  { %v455_v0 = vpop.f32.mrf.mxu2 }
 0x208   :  { %v456_v1 = vadd.f32 %v937_v39, %v455_v0 }
 0x20a   :  { %v466_v4 = vmax.f32 %v456_v1, 0.0 }
 0x20f   :  { %v457_v2 = vpop.f32.mrf.mxu2 }
 0x210   :  { %v458_v3 = vadd.f32 %v937_v39, %v457_v2 }
 0x212   :  { %v467_v5 = vmax.f32 %v458_v3, 0.0 }
 0x214   :  { %v471_v6 = vpack.c.bf16 %v467_v5, %v466_v4 }
 0x216   :  { %563 = vmatmul.bf16.gmra.mxu3 %v471_v6 }
 0x269   :  { %v549_v11 = vpop.f32.mrf.mxu3 }
 0x26a   :  { %v550_v13 = vadd.f32 %v938_v12, %v549_v11 }
 0x26c   :  { %v569_v16 = vmax.f32 %v550_v13, 0.0 }
 0x271   :  { %v551_v14 = vpop.f32.mrf.mxu3 }
 0x272   :  { %v552_v15 = vadd.f32 %v938_v12, %v551_v14 }
 0x274   :  { %v570_v17 = vmax.f32 %v552_v15, 0.0 }
 0x276   :  { %v577_v18 = vpack.c.bf16 %v570_v17, %v569_v16 }
 0x278   :  { %657 = vmatmul.bf16.vlgmr.msrb.gmra.mxu0 %v577_v18 }
 0x279   :  { %v554_v19 = vpop.f32.mrf.mxu3 }
 0x27a   :  { %v555_v20 = vadd.f32 %v938_v12, %v554_v19 }
 0x27c   :  { %v571_v23 = vmax.f32 %v555_v20, 0.0 }
 0x281   :  { %v556_v21 = vpop.f32.mrf.mxu3 }
 0x282   :  { %v557_v22 = vadd.f32 %v938_v12, %v556_v21 }
 0x284   :  { %v572_v24 = vmax.f32 %v557_v22, 0.0 }
 0x286   :  { %v578_v25 = vpack.c.bf16 %v572_v24, %v571_v23 }
 0x288   :  { %662 = vmatmul.bf16.gmra.mxu0 %v578_v25 }
 0x289   :  { %v559_v26 = vpop.f32.mrf.mxu3 }
 0x28a   :  { %v560_v27 = vadd.f32 %v938_v12, %v559_v26 }
 0x28c   :  { %v573_v30 = vmax.f32 %v560_v27, 0.0 }
 0x291   :  { %v561_v28 = vpop.f32.mrf.mxu3 }
 0x292   :  { %v562_v29 = vadd.f32 %v938_v12, %v561_v28 }
 0x294   :  { %v574_v31 = vmax.f32 %v562_v29, 0.0 }
 0x296   :  { %v579_v32 = vpack.c.bf16 %v574_v31, %v573_v30 }
 0x298   :  { %667 = vmatmul.bf16.gmra.mxu0 %v579_v32 }
 0x299   :  { %v564_v33 = vpop.f32.mrf.mxu3 }
 0x29a   :  { %v565_v34 = vadd.f32 %v938_v12, %v564_v33 }
 0x29c   :  { %v575_v37 = vmax.f32 %v565_v34, 0.0 }
 0x2a1   :  { %v566_v35 = vpop.f32.mrf.mxu3 }
 0x2a2   :  { %v567_v36 = vadd.f32 %v938_v12, %v566_v35 }
 0x2a4   :  { %v576_v38 = vmax.f32 %v567_v36, 0.0 }
 0x2a6   :  { %v580_v39 = vpack.c.bf16 %v576_v38, %v575_v37 }
 0x2a8   :  { %672 = vmatmul.bf16.vlgmr.msrb.gmra.mxu2 %v580_v39 }
 0x2f5   :  { %v658_v41 = vpop.f32.mrf.mxu0 }
 0x2f6   :  { %v659_v42 = vadd.f32 %v939_v40, %v658_v41 }
 0x2f8   :  { %678 = vst [vmem:[#allocation13] sm:$0xff] %v659_v42 }
 0x2fd   :  { %v660_v43 = vpop.f32.mrf.mxu0 }
 0x2fe   :  { %v661_v44 = vadd.f32 %v939_v40, %v660_v43 }
 0x300   :  { %679 = vst [vmem:[#allocation13 + $0x8] sm:$0xff] %v661_v44 }
 0x305   :  { %v663_v45 = vpop.f32.mrf.mxu0 }
 0x306   :  { %v664_v46 = vadd.f32 %v939_v40, %v663_v45 }
 0x308   :  { %680 = vst [vmem:[#allocation13 + $0x10] sm:$0xff] %v664_v46 }
 0x30d   :  { %v665_v47 = vpop.f32.mrf.mxu0 }
 0x30e   :  { %v666_v48 = vadd.f32 %v939_v40, %v665_v47 }
 0x310   :  { %681 = vst [vmem:[#allocation13 + $0x18] sm:$0xff] %v666_v48 }
 0x315   :  { %v668_v49 = vpop.f32.mrf.mxu0 }
 0x316   :  { %v669_v50 = vadd.f32 %v939_v40, %v668_v49 }
 0x318   :  { %682 = vst [vmem:[#allocation13 + $0x20] sm:$0xff] %v669_v50 }
 0x31d   :  { %v670_v51 = vpop.f32.mrf.mxu0 }
 0x31e   :  { %v671_v52 = vadd.f32 %v939_v40, %v670_v51 }
 0x320   :  { %683 = vst [vmem:[#allocation13 + $0x28] sm:$0xff] %v671_v52 }
 0x32b   :  { %v673_v53 = vpop.f32.mrf.mxu2 }
 0x32c   :  { %v674_v54 = vadd.f32 %v939_v40, %v673_v53 }
 0x32e   :  { %684 = vst [vmem:[#allocation13 + $0x30] sm:$0xff] %v674_v54 }
 0x333   :  { %v675_v55 = vpop.f32.mrf.mxu2 }
 0x334   :  { %v676_v56 = vadd.f32 %v939_v40, %v675_v55 }
 0x336   :  { %685 = vst [vmem:[#allocation13 + $0x38] sm:$0xff] %v676_v56 }
 0x337   :  { %698 = dma.vmem_to_hbm [thread:$0]  %s691_s3, 1024, %s693_s14, [#allocation4], %s1123_s16, %s1123_s16, %s1124_s17  }
 0x338   :  { %1116 = dma.done.wait [#allocation4], 1024  }
 0x339   :  { %1117 = vsyncadd [#allocation4], 4294966272 }
 0x33a   :  { %703 = vsyncpa [#allocation3], 1 }
 0x33b   :  { %704 = vsyncpa [#allocation6], 1 }
 0x33c   :  { %705 = vsyncpa [#allocation9], 1 }
 0x33d   :  { %706 = vsyncpa [#allocation12], 1 }
 0x33e   :  { %707 = vsyncpa [#allocation4], 1 }

</bundles_post_ra>
